<compile_context>
chip_gen: v7x
topology: tpu7x:2x2x1
jax: 0.10.0
libtpu: 0.0.40
codegen_flags: <defaults>
</compile_context>

<pallas_src>
import math

import jax
import jax.numpy as jnp
from jax.experimental import pallas as pl
from jax.experimental.pallas import tpu as pltpu


class BracketedSequence:
    """JAX port of the PyTorch BracketedSequence helper."""

    def __init__(self, x, first=None, nb=None):
        self.x = x
        self.first = 0 if first is None else first
        self.nb = x.shape[1] if nb is None else nb

    def slice(self):
        return self.x[:, self.first:self.first + self.nb]

    def complete(self):
        return self.first == 0 and self.nb == self.x.shape[1]


def _cached_linear_kernel(x_ref, w_ref, b_ref, cache_hbm_ref, cache_out_ref):
    """One sequence-chunk step: cache[:, chunk] = x[:, chunk] @ W + b.

    x_ref:         (B, TILE_S, D_in)   chunk of the activation slice (VMEM)
    w_ref:         (D_in, D_out)       pre-transposed weight; constant block
                                       index -> DMA'd once, resident all steps
    b_ref:         (1, D_out)          bias, stored f32 (epilogue stays f32;
                                       v5e VPUs have no bf16 path)
    cache_hbm_ref: full cache, memory_space=ANY, aliased to the output;
                   never read and never DMA'd (zero extra HBM traffic)
    cache_out_ref: (B, TILE_S, D_out)  destination block inside the cache
    """
    del cache_hbm_ref  # donation handle only; this kernel overwrites blocks.
    b, ts, d_in = x_ref.shape
    # Fold batch into the matmul M dimension (M = B*TILE_S) so the MXU is
    # filled instead of issuing 1-row-batch matmuls.  ts is a multiple of 8,
    # so the collapse is a layout-preserving reshape.
    x2d = x_ref[...].reshape(b * ts, d_in)
    y = jnp.dot(x2d, w_ref[...], preferred_element_type=jnp.float32)
    y = y + b_ref[...].astype(jnp.float32)
    cache_out_ref[...] = y.reshape(b, ts, -1).astype(cache_out_ref.dtype)


def _pick_seq_tile(first, nb, batch, d_in, d_out, x_itemsize, y_itemsize,
                   vmem_budget):
    """Largest sequence chunk t such that:
      * t is a multiple of 8 (sublane granule; keeps the (8,128) block rule),
      * t divides nb and first (block indices land exactly on [first, first+nb)),
      * the streamed, double-buffered working set (x chunk + cache-out chunk)
        fits in the VMEM budget left after the resident weight."""
    per_row = batch * (d_in * x_itemsize + d_out * y_itemsize) * 2  # 2 buffers
    cap = vmem_budget // max(per_row, 1)
    cap = max(8, min(1024, cap, nb))
    cap -= cap % 8
    for t in range(cap, 7, -8):
        if nb % t == 0 and first % t == 0:
            return t
    raise NotImplementedError(
        "unaligned cache update (first=%d, nb=%d): needs pl.Element-based "
        "sequence indexing for per-token decode" % (first, nb))


def cached_linear_update(x, w_t, b2d, cache, first, nb):
    """Fused `cache[:, first:first+nb] = x[:, first:first+nb] @ W + b` (in place).

    x:     (B, S, D_in)   full activation (only the slice is streamed)
    w_t:   (D_in, D_out)  pre-transposed weight
    b2d:   (1, D_out)     bias (f32)
    cache: (B, S, D_out)  persistent cache; aliased/donated to the output
    first, nb: static Python ints (as in the PyTorch module)
    """
    B, S, d_in = x.shape
    d_out = w_t.shape[1]
    first = int(first)
    nb = int(nb)
    assert 0 <= first and nb >= 1 and first + nb <= S
    assert cache.shape == (B, S, d_out)

    x_isz = jnp.dtype(x.dtype).itemsize
    y_isz = jnp.dtype(cache.dtype).itemsize
    w_isz = jnp.dtype(w_t.dtype).itemsize
    b_isz = jnp.dtype(b2d.dtype).itemsize

    # Weight + bias stay resident (constant block index); budget the streamed
    # tiles against what is left of a conservative ~16 MiB working target
    # (v7x: 64 MiB physical / 32 MiB default-scoped VMEM).
    w_resident = d_in * d_out * w_isz * 2 + d_out * b_isz * 2
    stream_budget = max(2 * 1024 * 1024, 16 * 1024 * 1024 - w_resident)

    tile_s = _pick_seq_tile(first, nb, B, d_in, d_out, x_isz, y_isz,
                            stream_budget)
    n_s = nb // tile_s
    first_blk = first // tile_s

    grid = (n_s,)  # seq-chunk axis; "parallel" -> megacore sharding on v7x.
    x_spec = pl.BlockSpec((B, tile_s, d_in), lambda s: (0, first_blk + s, 0))
    w_spec = pl.BlockSpec((d_in, d_out), lambda s: (0, 0))
    b_spec = pl.BlockSpec((1, d_out), lambda s: (0, 0))
    cache_out_spec = pl.BlockSpec((B, tile_s, d_out),
                                  lambda s: (0, first_blk + s, 0))
    # Aliased cache input is never read: leave it in HBM, no per-step DMA.
    cache_in_spec = pl.BlockSpec(memory_space=pl.ANY)

    # Explicit VMEM limit from the actual buffers (streamed tiles are
    # double-buffered) plus headroom for compiler-internal scratch.
    stream_bytes = B * tile_s * (d_in * x_isz + d_out * y_isz) * 2
    vmem_limit = int(min(100 * 2**20,
                         max(16 * 2**20,
                             stream_bytes + w_resident + 4 * 2**20)))

    cost = pl.CostEstimate(
        flops=2 * B * nb * d_in * d_out,
        transcendentals=0,
        bytes_accessed=(B * nb * (d_in * x_isz + d_out * y_isz)
                        + d_in * d_out * w_isz + d_out * b_isz),
    )

    return pl.pallas_call(
        _cached_linear_kernel,
        out_shape=jax.ShapeDtypeStruct(cache.shape, cache.dtype),
        grid=grid,
        in_specs=[x_spec, w_spec, b_spec, cache_in_spec],
        out_specs=cache_out_spec,
        input_output_aliases={3: 0},   # cache input -> output (in-place update)
        compiler_params=pltpu.CompilerParams(
            dimension_semantics=("parallel",),
            vmem_limit_bytes=vmem_limit,
        ),
        cost_estimate=cost,
    )(x, w_t, b2d, cache)


class PallasCacheWrapper:
    """JAX/Pallas equivalent of CacheWrapper(nn.Linear(dim_in, dim_out))."""

    def __init__(self, w_t, b2d, cache_dtype=None):
        self.w_t = w_t          # (D_in, D_out), stored pre-transposed at init
        self.b2d = b2d          # (1, D_out), kept f32
        self.cache_dtype = cache_dtype
        self.cache_y = None

    def __call__(self, bs):
        x = bs.x
        B, S, _ = x.shape
        d_out = self.w_t.shape[1]
        cache_dtype = (self.cache_dtype if self.cache_dtype is not None
                       else x.dtype)
        if (self.cache_y is None
                or self.cache_y.shape != (B, S, d_out)
                or self.cache_y.dtype != jnp.dtype(cache_dtype)):
            # torch: cache_y = y.new(...) (uninitialised). Allocate once and
            # reuse across sequence restarts via donation; zero-filling on
            # every restart would be a full-cache HBM write.
            self.cache_y = jnp.zeros((B, S, d_out), dtype=cache_dtype)
        self.cache_y = cached_linear_update(
            x, self.w_t, self.b2d, self.cache_y, bs.first, bs.nb)
        return BracketedSequence(self.cache_y, bs.first, bs.nb)


def init_cached_linear_params(key, dim_in, dim_out, dtype=jnp.float32):
    """nn.Linear default init; weight returned pre-transposed (D_in, D_out).
    Bias is always kept in f32 (epilogue stays f32 on every TPU generation)."""
    k_w, k_b = jax.random.split(key)
    bound = 1.0 / math.sqrt(dim_in)
    w_t = jax.random.uniform(k_w, (dim_in, dim_out), dtype=jnp.float32,
                             minval=-bound, maxval=bound).astype(dtype)
    b2d = jax.random.uniform(k_b, (1, dim_out), dtype=jnp.float32,
                             minval=-bound, maxval=bound)
    return w_t, b2d


if __name__ == "__main__":
    # Lane-dense demo shapes (feature dims multiples of 128 -> unmasked vst);
    # the cache is filled in two aligned chunks, exercising both branches of
    # CacheWrapper.forward.  TILE_S resolves to 16 so bf16 sublane packing
    # (16,128) is also clean.
    B, S, D_IN, D_OUT = 2, 32, 128, 256
    NB = 16

    key = jax.random.PRNGKey(0)
    k_x, k_p = jax.random.split(key)
    x = jax.random.normal(k_x, (B, S, D_IN), dtype=jnp.float32)

    # ---------------- f32 path: tight reference check ----------------
    w_t, b2d = init_cached_linear_params(k_p, D_IN, D_OUT, dtype=jnp.float32)
    wrapper = PallasCacheWrapper(w_t, b2d)
    y_full = x @ w_t + b2d   # pure-JAX reference of the linear at every position

    # chunk 0: first == 0 -> allocate cache, fill [:, :NB]
    out0 = wrapper(BracketedSequence(x, 0, NB))
    # Copy to host BEFORE the next call donates the cache buffer.
    cache0 = jax.device_get(jax.block_until_ready(out0.x))
    assert out0.x.shape == (B, S, D_OUT)
    assert out0.first == 0 and out0.nb == NB
    assert jnp.allclose(cache0[:, :NB], y_full[:, :NB], atol=1e-4, rtol=1e-4)
    assert jnp.allclose(cache0[:, NB:], 0.0)   # untouched tail of fresh cache

    # chunk 1: first == NB -> in-place update of [:, NB:2*NB]
    out1 = wrapper(BracketedSequence(x, NB, NB))
    cache1 = jax.device_get(jax.block_until_ready(out1.x))
    assert out1.first == NB and out1.nb == NB
    assert jnp.allclose(cache1, y_full, atol=1e-4, rtol=1e-4)

    # -------- bf16 path: halves HBM traffic on this mem-bound kernel --------
    x_bf = x.astype(jnp.bfloat16)
    w_bf, b_bf = init_cached_linear_params(k_p, D_IN, D_OUT, dtype=jnp.bfloat16)
    wrapper_bf = PallasCacheWrapper(w_bf, b_bf, cache_dtype=jnp.bfloat16)
    y_ref_bf = x_bf.astype(jnp.float32) @ w_bf.astype(jnp.float32) + b_bf

    o0 = wrapper_bf(BracketedSequence(x_bf, 0, NB))
    c0 = jax.device_get(jax.block_until_ready(o0.x))
    assert jnp.allclose(c0[:, :NB].astype(jnp.float32), y_ref_bf[:, :NB],
                        atol=2e-2, rtol=2e-2)
    o1 = wrapper_bf(BracketedSequence(x_bf, NB, NB))
    c1 = jax.device_get(jax.block_until_ready(o1.x))
    assert c1.dtype == jnp.bfloat16
    assert jnp.allclose(c1.astype(jnp.float32), y_ref_bf, atol=2e-2, rtol=2e-2)

    print("KERNEL_OK")
</pallas_src>

<mosaic_0001>
module attributes {stable_mosaic.version = 11 : i64} {
  func.func @_cached_linear_kernel(%arg0: i32, %arg1: memref<2x16x128xf32, #tpu.memory_space<vmem>>, %arg2: memref<128x256xf32, #tpu.memory_space<vmem>>, %arg3: memref<1x256xf32, #tpu.memory_space<vmem>>, %arg4: memref<2x32x256xf32, #tpu.memory_space<any>>, %arg5: memref<2x16x256xf32, #tpu.memory_space<vmem>>) attributes {dimension_semantics = [#tpu.dimension_semantics<parallel>], iteration_bounds = array<i64: 1>, scalar_prefetch = 0 : i64, scratch_operands = 0 : i64, tpu.core_type = #tpu.core_type<tc>, window_params = [{transform_indices = @transform_0, window_bounds = array<i64: 2, 16, 128>}, {pipeline_mode = #tpu.pipeline_mode<synchronous>, transform_indices = @transform_1, window_bounds = array<i64: 128, 256>}, {pipeline_mode = #tpu.pipeline_mode<synchronous>, transform_indices = @transform_2, window_bounds = array<i64: 1, 256>}, {}, {transform_indices = @transform_4, window_bounds = array<i64: 2, 16, 256>}]} {
    %c0 = arith.constant 0 : index
    %c0_0 = arith.constant 0 : index
    %c0_1 = arith.constant 0 : index
    %0 = vector.load %arg1[%c0, %c0_0, %c0_1] : memref<2x16x128xf32, #tpu.memory_space<vmem>>, vector<2x16x128xf32>
    %1 = vector.shape_cast %0 : vector<2x16x128xf32> to vector<32x128xf32>
    %c0_2 = arith.constant 0 : index
    %c0_3 = arith.constant 0 : index
    %2 = vector.load %arg2[%c0_2, %c0_3] : memref<128x256xf32, #tpu.memory_space<vmem>>, vector<128x256xf32>
    %cst = arith.constant dense<0.000000e+00> : vector<32x256xf32>
    %3 = tpu.matmul %1, %2, %cst {dimension_numbers = #tpu.dot_dimension_numbers<[1], [0], [0], [1], [0, 0, 1, 1], [], []>} : vector<32x128xf32>, vector<128x256xf32>, vector<32x256xf32> -> vector<32x256xf32>
    %c0_4 = arith.constant 0 : index
    %c0_5 = arith.constant 0 : index
    %4 = vector.load %arg3[%c0_4, %c0_5] : memref<1x256xf32, #tpu.memory_space<vmem>>, vector<1x256xf32>
    %5 = vector.broadcast %4 : vector<1x256xf32> to vector<32x256xf32>
    %6 = arith.addf %3, %5 : vector<32x256xf32>
    %7 = vector.shape_cast %6 : vector<32x256xf32> to vector<2x16x256xf32>
    %c0_6 = arith.constant 0 : index
    %c0_7 = arith.constant 0 : index
    %c0_8 = arith.constant 0 : index
    %8 = vector.load %arg5[%c0_6, %c0_7, %c0_8] : memref<2x16x256xf32, #tpu.memory_space<vmem>>, vector<2x16x256xf32>
    tpu.vector_store %arg5[%c0_6, %c0_7, %c0_8], %7 {strides = array<i32>} : memref<2x16x256xf32, #tpu.memory_space<vmem>>, vector<2x16x256xf32>,
    return
  }
  func.func @transform_0(%arg0: i32) -> (i32, i32, i32) {
    %c0_i32 = arith.constant 0 : i32
    %0 = arith.addi %c0_i32, %arg0 : i32
    %c0_i32_0 = arith.constant 0 : i32
    %c0_i32_1 = arith.constant 0 : i32
    %c0_i32_2 = arith.constant 0 : i32
    return %c0_i32_0, %0, %c0_i32_1 : i32, i32, i32
  }
  func.func @transform_1(%arg0: i32) -> (i32, i32) {
    %c0_i32 = arith.constant 0 : i32
    %c0_i32_0 = arith.constant 0 : i32
    %c0_i32_1 = arith.constant 0 : i32
    return %c0_i32, %c0_i32_0 : i32, i32
  }
  func.func @transform_2(%arg0: i32) -> (i32, i32) {
    %c0_i32 = arith.constant 0 : i32
    %c0_i32_0 = arith.constant 0 : i32
    %c0_i32_1 = arith.constant 0 : i32
    return %c0_i32, %c0_i32_0 : i32, i32
  }
  func.func @transform_4(%arg0: i32) -> (i32, i32, i32) {
    %c0_i32 = arith.constant 0 : i32
    %0 = arith.addi %c0_i32, %arg0 : i32
    %c0_i32_0 = arith.constant 0 : i32
    %c0_i32_1 = arith.constant 0 : i32
    %c0_i32_2 = arith.constant 0 : i32
    return %c0_i32_0, %0, %c0_i32_1 : i32, i32, i32
  }
}

</mosaic_0001>

<bundles_post_ra>
// kernel: tpu_custom_call.1
= control target key start
LH: loop header
LB: loop body
LE: loop exit
PB: predicated region body
PF: predicated region fallthrough
CT: control target
= control target key end

     0   :  { %9 = vsyncpa [#allocation3], 0  ;;  %s470_s0 = inlined_call_operand.hbm [shape: f32[2,32,128], index: 0, kind: input, shape index: {}]   ;;  %s471_s1 = inlined_call_operand.vmem [shape: f32[128,256], index: 1, kind: input, shape index: {}]   ;;  %s472_s2 = inlined_call_operand.vmem [shape: f32[1,256], index: 2, kind: input, shape index: {}]   ;;  %s473_s3 = inlined_call_operand.hbm [shape: f32[2,32,256], index: 3, kind: input, shape index: {}, may-alias: {3,4}]   ;;  %s474_s4 = inlined_call_operand.hbm [shape: f32[2,32,256], index: 4, kind: output, shape index: {}, may-alias: {3,4}]  }
   0x1   :  { %10 = vsyncpa [#allocation4], 0 }
   0x2   :  { %s20_s15 = sld [smem:[#allocation0]]   ;;  %s318_s16 = smov [#allocation2]  }
   0x3   :  { %s28_s17 = sshll.u32 %s318_s16, 4  ;;  %s319_s18 = smov 512   ;;  %s29_s17 = int_to_ptr.vmem [resolvable:$true] %s28_s17 }
   0x4   :  { %35 = sst [smem:[#allocation7]] %s319_s18  ;;  %s320_s19 = smov 256  }
   0x5   :  { %37 = sst [smem:[#allocation7 + $0x1]] %s320_s19  ;;  %s321_s20 = smov 2  }
   0x6   :  { %39 = sst [smem:[#allocation7 + $0x2]] %s321_s20  ;;  %s322_s22 = smov 128  }
   0x7   :  { %41 = sst [smem:[#allocation7 + $0x3]] %s322_s22  ;;  %s323_s3 = smov 8  }
   0x8   :  { %s246_s21 = sshll.u32 %s20_s15, 26  ;;  %43 = sst [smem:[#allocation7 + $0x4]] %s322_s22 }
   0x9   :  { %s247_s23 = sadd.s32 134217728, %s246_s21  ;;  %45 = sst [smem:[#allocation7 + $0x5]] %s323_s3 }
   0xa   :  { %s324_s24 = smov [#allocation3]   ;;  %s325_s25 = smov [#allocation6]  }
   0xb   :  { %47 = dma.general %s470_s0, 512, %s29_s17, %s324_s24, %s325_s25, [#allocation7], %s247_s23, 0  }
   0xc   :  { %314 = dma.done.wait [#allocation3], 512  }
   0xd   :  { %315 = vsyncadd [#allocation3], 4294966784  ;;  %v326_v0 = vmov 0.0   ;;  %v60_v1 = vld [vmem:[%s471_s1 + $0x8] sm:$0xff]  ;;  %v62_v2 = vld [vmem:[%s471_s1 + $0x18] sm:$0xff]  ;;  %v93_v53 = vlaneseq }
   0xe   :  { %167 = vmatprep.mubr.f32.mxu0 %v326_v0  ;;  %179 = vmatprep.mubr.f32.mxu1 %v326_v0  ;;  %v59_v3 = vld [vmem:[%s471_s1] sm:$0xff]  ;;  %v248_v4 = vpack.c.bf16 %v62_v2, %v60_v1  ;;  %v61_v5 = vld [vmem:[%s471_s1 + $0x10] sm:$0xff]  ;;  %v64_v6 = vld [vmem:[%s471_s1 + $0x28] sm:$0xff] }
   0xf   :  { %v66_v7 = vld [vmem:[%s471_s1 + $0x38] sm:$0xff]  ;;  %v250_v8 = vpack.c.bf16 %v61_v5, %v59_v3  ;;  %v63_v10 = vld [vmem:[%s471_s1 + $0x20] sm:$0xff]  ;;  %v65_v11 = vld [vmem:[%s471_s1 + $0x30] sm:$0xff]  ;;  %v94_v54 = vshrl.u32 %v93_v53, 7 }
  0x10   :  { %v252_v9 = vpack.c.bf16 %v66_v7, %v64_v6  ;;  %v68_v12 = vld [vmem:[%s471_s1 + $0x48] sm:$0xff]  ;;  %249 = vmatprep.subr.bf16.mxu0 %v248_v4  ;;  %280 = vmatprep.subr.bf16.mxu1 %v248_v4  ;;  %v70_v13 = vld [vmem:[%s471_s1 + $0x58] sm:$0xff]  ;;  %v254_v14 = vpack.c.bf16 %v65_v11, %v63_v10  ;;  %v67_v16 = vld [vmem:[%s471_s1 + $0x40] sm:$0xff] }
  0x11   :  { %251 = vmatpush1.bf16.msra.mxu0 %v250_v8  ;;  %288 = vmatpush1.bf16.msra.mxu1 %v250_v8  ;;  %v256_v15 = vpack.c.bf16 %v70_v13, %v68_v12  ;;  %v69_v17 = vld [vmem:[%s471_s1 + $0x50] sm:$0xff]  ;;  %v72_v18 = vld [vmem:[%s471_s1 + $0x68] sm:$0xff]  ;;  %v74_v19 = vld [vmem:[%s471_s1 + $0x78] sm:$0xff]  ;;  %v95_v55 = vsub.s32 0, %v94_v54  ;;  %v99_v57 = vsub.s32 1, %v94_v54 }
  0x12   :  { %253 = vmatprep.subr.bf16.mxu0 %v252_v9  ;;  %281 = vmatprep.subr.bf16.mxu1 %v252_v9  ;;  %v258_v20 = vpack.c.bf16 %v69_v17, %v67_v16  ;;  %v260_v21 = vpack.c.bf16 %v74_v19, %v72_v18  ;;  %v71_v22 = vld [vmem:[%s471_s1 + $0x60] sm:$0xff]  ;;  %v73_v23 = vld [vmem:[%s471_s1 + $0x70] sm:$0xff]  ;;  %v76_v24 = vld [vmem:[%s471_s1 + $0x88] sm:$0xff] }
  0x13   :  { %v78_v25 = vld [vmem:[%s471_s1 + $0x98] sm:$0xff]  ;;  %v262_v26 = vpack.c.bf16 %v73_v23, %v71_v22  ;;  %v75_v28 = vld [vmem:[%s471_s1 + $0x80] sm:$0xff]  ;;  %v77_v29 = vld [vmem:[%s471_s1 + $0x90] sm:$0xff] }
  0x14   :  { %v264_v27 = vpack.c.bf16 %v78_v25, %v76_v24  ;;  %v80_v30 = vld [vmem:[%s471_s1 + $0xa8] sm:$0xff]  ;;  %v82_v31 = vld [vmem:[%s471_s1 + $0xb8] sm:$0xff]  ;;  %v266_v32 = vpack.c.bf16 %v77_v29, %v75_v28  ;;  %v79_v34 = vld [vmem:[%s471_s1 + $0xa0] sm:$0xff] }
  0x15   :  { %255 = vmatpush1.bf16.msra.mxu0 %v254_v14  ;;  %289 = vmatpush1.bf16.msra.mxu1 %v254_v14  ;;  %v268_v33 = vpack.c.bf16 %v82_v31, %v80_v30  ;;  %v81_v35 = vld [vmem:[%s471_s1 + $0xb0] sm:$0xff]  ;;  %v84_v36 = vld [vmem:[%s471_s1 + $0xc8] sm:$0xff]  ;;  %v86_v37 = vld [vmem:[%s471_s1 + $0xd8] sm:$0xff] }
  0x16   :  { %257 = vmatprep.subr.bf16.mxu0 %v256_v15  ;;  %282 = vmatprep.subr.bf16.mxu1 %v256_v15  ;;  %v270_v38 = vpack.c.bf16 %v81_v35, %v79_v34  ;;  %v272_v39 = vpack.c.bf16 %v86_v37, %v84_v36  ;;  %v83_v40 = vld [vmem:[%s471_s1 + $0xc0] sm:$0xff]  ;;  %v85_v41 = vld [vmem:[%s471_s1 + $0xd0] sm:$0xff]  ;;  %v88_v42 = vld [vmem:[%s471_s1 + $0xe8] sm:$0xff] }
  0x17   :  { %v90_v43 = vld [vmem:[%s471_s1 + $0xf8] sm:$0xff]  ;;  %v274_v44 = vpack.c.bf16 %v85_v41, %v83_v40  ;;  %v87_v46 = vld [vmem:[%s471_s1 + $0xe0] sm:$0xff]  ;;  %v89_v47 = vld [vmem:[%s471_s1 + $0xf0] sm:$0xff] }
  0x18   :  { %v276_v45 = vpack.c.bf16 %v90_v43, %v88_v42  ;;  %v278_v48 = vpack.c.bf16 %v89_v47, %v87_v46  ;;  %v55_v49 = vld [vmem:[#allocation2] sm:$0xff]  ;;  %v57_v50 = vld [vmem:[#allocation2 + $0x10] sm:$0xff]  ;;  %v56_v51 = vld [vmem:[#allocation2 + $0x8] sm:$0xff] }
  0x19   :  { %259 = vmatpush1.bf16.msra.mxu0 %v258_v20  ;;  %290 = vmatpush1.bf16.msra.mxu1 %v258_v20  ;;  %v58_v52 = vld [vmem:[#allocation2 + $0x18] sm:$0xff]  ;;  %v91_v56 = vld [vmem:[%s472_s2] sm:$0x3] }
  0x1a   :  { %261 = vmatprep.subr.bf16.mxu0 %v260_v21  ;;  %283 = vmatprep.subr.bf16.mxu1 %v260_v21  ;;  %v96_v58 = vrot.slane %v91_v56, %v95_v55  ;;  %v100_v59 = vrot.slane %v91_v56, %v99_v57 }
  0x1d   :  { %263 = vmatpush1.bf16.msra.mxu0 %v262_v26  ;;  %291 = vmatpush1.bf16.msra.mxu1 %v262_v26 }
  0x1e   :  { %265 = vmatprep.subr.bf16.mxu0 %v264_v27  ;;  %284 = vmatprep.subr.bf16.mxu1 %v264_v27 }
  0x21   :  { %267 = vmatpush1.bf16.msra.mxu0 %v266_v32  ;;  %292 = vmatpush1.bf16.msra.mxu1 %v266_v32 }
  0x22   :  { %269 = vmatprep.subr.bf16.mxu0 %v268_v33  ;;  %285 = vmatprep.subr.bf16.mxu1 %v268_v33 }
  0x25   :  { %271 = vmatpush1.bf16.msra.mxu0 %v270_v38  ;;  %293 = vmatpush1.bf16.msra.mxu1 %v270_v38 }
  0x26   :  { %273 = vmatprep.subr.bf16.mxu0 %v272_v39  ;;  %286 = vmatprep.subr.bf16.mxu1 %v272_v39 }
  0x29   :  { %275 = vmatpush1.bf16.msra.mxu0 %v274_v44  ;;  %294 = vmatpush1.bf16.msra.mxu1 %v274_v44 }
  0x2a   :  { %277 = vmatprep.subr.bf16.mxu0 %v276_v45  ;;  %287 = vmatprep.subr.bf16.mxu1 %v276_v45 }
  0x2d   :  { %279 = vmatpush1.bf16.msra.mxu0 %v278_v48  ;;  %295 = vmatpush1.bf16.msra.mxu1 %v278_v48 }
  0x30   :  { %168 = vmatmul.mubr.f32.vlgmr.msra.gmra.mrb[0].mxu0 %v55_v49  ;;  %180 = vmatmul.mubr.f32.vlgmr.msra.gmra.mrb[0].mxu1 %v57_v50 }
  0x31   :  { %173 = vmatprep.mubr.f32.mxu0 %v326_v0  ;;  %185 = vmatprep.mubr.f32.mxu1 %v326_v0 }
  0x34   :  { %174 = vmatmul.mubr.f32.gmra.mrb[2].mxu0 %v56_v51  ;;  %186 = vmatmul.mubr.f32.gmra.mrb[2].mxu1 %v58_v52 }
 0x103   :  { %v169_v60 = vpop.f32.mrb[0].mxu0  ;;  %v181_v61 = vpop.f32.mrb[0].mxu1 }
 0x104   :  { %v170_v62 = vadd.f32 %v169_v60, %v96_v58  ;;  %v182_v63 = vadd.f32 %v181_v61, %v96_v58  ;;  %v171_v1 = vpop.f32.mrb[1].mxu0  ;;  %v183_v0 = vpop.f32.mrb[1].mxu1 }
 0x105   :  { %v172_v2 = vadd.f32 %v171_v1, %v100_v59  ;;  %v184_v3 = vadd.f32 %v183_v0, %v100_v59 }
 0x106   :  { %192 = vst [vmem:[#allocation5] sm:$0xff] %v170_v62  ;;  %196 = vst [vmem:[#allocation5 + $0x20] sm:$0xff] %v182_v63 }
 0x107   :  { %193 = vst [vmem:[#allocation5 + $0x8] sm:$0xff] %v172_v2  ;;  %197 = vst [vmem:[#allocation5 + $0x28] sm:$0xff] %v184_v3  ;;  %v175_v4 = vpop.f32.mrb[2].mxu0  ;;  %v187_v5 = vpop.f32.mrb[2].mxu1 }
 0x108   :  { %v176_v6 = vadd.f32 %v175_v4, %v96_v58  ;;  %v188_v7 = vadd.f32 %v187_v5, %v96_v58  ;;  %v177_v8 = vpop.f32.mrb[3].mxu0  ;;  %v189_v9 = vpop.f32.mrb[3].mxu1 }
 0x109   :  { %v178_v10 = vadd.f32 %v177_v8, %v100_v59  ;;  %v190_v11 = vadd.f32 %v189_v9, %v100_v59 }
 0x10a   :  { %194 = vst [vmem:[#allocation5 + $0x10] sm:$0xff] %v176_v6  ;;  %198 = vst [vmem:[#allocation5 + $0x30] sm:$0xff] %v188_v7 }
 0x10b   :  { %195 = vst [vmem:[#allocation5 + $0x18] sm:$0xff] %v178_v10  ;;  %199 = vst [vmem:[#allocation5 + $0x38] sm:$0xff] %v190_v11 }
 0x10c   :  { %s327_s2 = smov [#allocation5]   ;;  %s328_s11 = smov 512  }
 0x10d   :  { %s221_s10 = sshll.u32 %s327_s2, 4  ;;  %228 = sst [smem:[#allocation9]] %s328_s11  ;;  %s222_s10 = int_to_ptr.vmem [resolvable:$true] %s221_s10 }
 0x10e   :  { %s329_s12 = smov 1024   ;;  %s330_s13 = smov 2  }
 0x10f   :  { %230 = sst [smem:[#allocation9 + $0x1]] %s329_s12  ;;  %s331_s14 = smov 256  }
 0x110   :  { %232 = sst [smem:[#allocation9 + $0x2]] %s330_s13  ;;  %s332_s15 = smov 16  }
 0x111   :  { %234 = sst [smem:[#allocation9 + $0x3]] %s331_s14  ;;  %s333_s16 = smov [#allocation4]  }
 0x112   :  { %236 = sst [smem:[#allocation9 + $0x4]] %s331_s14  ;;  %s334_s17 = smov [#allocation8]  }
 0x113   :  { %238 = sst [smem:[#allocation9 + $0x5]] %s332_s15  ;;  %s335_s18 = smov 0  }
 0x114   :  { %240 = dma.general %s222_s10, 1024, %s474_s4, %s333_s16, %s334_s17, [#allocation9], %s335_s18, 0  }
 0x115   :  { %316 = dma.done.wait [#allocation4], 1024  }
 0x116   :  { %317 = vsyncadd [#allocation4], 4294966272 }
 0x117   :  { %244 = vsyncpa [#allocation3], 1 }
 0x118   :  { %245 = vsyncpa [#allocation4], 1 }

</bundles_post_ra>
